<compile_context>
chip_gen: v5e
topology: v5e:2x2
jax: 0.10.0
libtpu: 0.0.40
codegen_flags: <defaults>
</compile_context>

<pallas_src>
import functools

import jax
import jax.numpy as jnp
from jax import lax
from jax.experimental import pallas as pl
from jax.experimental.pallas import tpu as pltpu


# ------------------------------------------------------------------
# Fused kernel: conv1(3x3,s)+BN+ReLU -> conv2(3x3,1)+BN -> +k_l*skip -> ReLU
# Activations are lane-packed 2-D slabs: value[b*rows + row, col*C + c], with the
# `nimg` images of this grid step stacked along the sublane (row) axis.
# ------------------------------------------------------------------
def _fused_block_kernel(*refs, H, Ho, stride, proj, nimg):
    if proj:
        (x_ref, w1_ref, s1_ref, b1_ref, w2_ref, s2_ref, b2_ref,
         wsk_ref, ssk_ref, bsk_ref, kl_ref, o_ref) = refs
    else:
        (x_ref, w1_ref, s1_ref, b1_ref, w2_ref, s2_ref, b2_ref,
         kl_ref, o_ref) = refs

    f32, bf16 = jnp.float32, jnp.bfloat16

    def conv3x3(zf, w_ref, s_row, h_in, h_out):
        # zf: (nimg*h_in, K) f32 stacked rows.
        # w_ref: (3, K, Nout) bf16 per-dy packed weights (kernel-column offset dx and
        # the column stride are already folded into each (K, Nout) matrix).
        rows_in = nimg * h_in
        rows_out = nimg * h_out
        oh = lax.broadcasted_iota(jnp.int32, (rows_out, 1), 0) % h_out
        acc = None
        for dy in range(3):
            # Row shift by (dy-1): XLU rotate, no scratch copy.  Wrapped rows and
            # cross-image rows are killed by the mask below.
            op = zf if dy == 1 else pltpu.roll(zf, shift=(1 - dy) % rows_in, axis=0)
            if s_row > 1:
                # Row stride: uniform strided row pick is exact because the wrapper
                # guarantees h_in % s_row == 0 or nimg == 1.
                op = op[::s_row]
            # Conv zero-padding in rows (dy == 1 never needs it).
            if dy == 0:
                op = jnp.where(s_row * oh - 1 >= 0, op, 0.0)
            elif dy == 2:
                op = jnp.where(s_row * oh + 1 < h_in, op, 0.0)
            part = jnp.dot(op.astype(bf16), w_ref[dy], preferred_element_type=f32)
            acc = part if acc is None else acc + part
        return acc

    xf = x_ref[...].astype(f32)                                   # (nimg*H, W*Cin)

    # ---- conv1 (3x3, stride s) + folded BN + ReLU ------------------------------------
    y1 = conv3x3(xf, w1_ref, stride, H, Ho)                       # (nimg*Ho, Wo*Cout)
    y1 = jnp.maximum(y1 * s1_ref[...] + b1_ref[...], 0.0)

    # ---- conv2 (3x3, stride 1) + folded BN (no ReLU) ---------------------------------
    y2 = conv3x3(y1, w2_ref, 1, Ho, Ho)
    y2 = y2 * s2_ref[...] + b2_ref[...]

    # ---- skip connection: 1x1 conv + BN projection, or identity ----------------------
    if proj:
        xsk = xf if stride == 1 else xf[::stride]
        skip = jnp.dot(xsk.astype(bf16), wsk_ref[...], preferred_element_type=f32)
        skip = skip * ssk_ref[...] + bsk_ref[...]
    else:
        skip = xf                        # identity: Cin == Cout, stride == 1

    # ---- residual merge + ReLU, lane-dense store --------------------------------------
    o_ref[...] = jnp.maximum(y2 + kl_ref[0] * skip, 0.0).astype(o_ref.dtype)


# ------------------------------------------------------------------
# Wrappers
# ------------------------------------------------------------------
def resnet_block_basic_nhwc(x_nhwc, params, *, stride=1, k_l=1.0,
                            out_dtype=jnp.bfloat16):
    """Fused ResnetBlockBasic forward, NHWC in / NHWC out (bf16 output by default for
    cheap chaining; pass out_dtype=jnp.float32 for exact PyTorch-style output)."""
    N, H, W, Cin = x_nhwc.shape
    Cout = params["w1"].shape[3]
    s = int(stride)
    Ho = (H - 1) // s + 1
    Wo = (W - 1) // s + 1
    proj = params["w_skip"] is not None
    if not proj and (Cin != Cout or s != 1):
        raise ValueError("identity skip requires Cin == Cout and stride == 1")

    f32, bf16 = jnp.float32, jnp.bfloat16

    # --- batch folding: B images per grid step so the conv matmuls see M = B*H rows ---
    max_b = max(1, 256 // H)
    if s > 1 and H % s != 0:
        max_b = 1                       # stacked strided-row trick needs H % s == 0
    B = 1
    for d in range(1, min(N, max_b) + 1):
        if N % d == 0:
            B = d
    grid = (N // B,)

    # --- host-side per-dy packed weights (dx offset + column stride folded in) --------
    wcol1 = jnp.arange(W)[:, None]
    wcol2 = jnp.arange(Wo)[:, None]
    vcol = jnp.arange(Wo)[None, :]

    def pack_per_dy(w_hwio, wcol, col_stride, cin):
        # out[dy][w*cin + c, v*Cout + d] = w_hwio[dy, dx, c, d] where w == col_stride*v + dx - 1
        w_f = w_hwio.astype(f32)
        mats = []
        for dy in range(3):
            m = 0.0
            for dx in range(3):
                sel = (wcol == col_stride * vcol + dx - 1).astype(f32)   # (Wi, Wo)
                m = m + jnp.einsum("cd,wv->wcvd", w_f[dy, dx], sel)
            mats.append(m.reshape(wcol.shape[0] * cin, Wo * Cout))
        return jnp.stack(mats).astype(bf16)                              # (3, K, Nout)

    w1p = pack_per_dy(params["w1"], wcol1, s, Cin)      # (3, W*Cin,   Wo*Cout)
    w2p = pack_per_dy(params["w2"], wcol2, 1, Cout)     # (3, Wo*Cout, Wo*Cout)

    def lane_tile(v):   # per-channel (c,) -> per-lane (1, Wo*c)
        return jnp.tile(jnp.asarray(v, f32).reshape(-1), Wo).reshape(1, -1)

    s1t, b1t = lane_tile(params["s1"]), lane_tile(params["b1"])
    s2t, b2t = lane_tile(params["s2"]), lane_tile(params["b2"])

    x2d = x_nhwc.astype(bf16).reshape(N * H, W * Cin)
    kl = jnp.asarray([k_l], f32)        # SMEM scalar: no recompile per k_l value

    inputs = [x2d, w1p, s1t, b1t, w2p, s2t, b2t]

    def full_spec(a):                   # weights / affines: whole array resident in VMEM
        nd = a.ndim
        return pl.BlockSpec(a.shape, lambda n, nd=nd: (0,) * nd)

    in_specs = [pl.BlockSpec((B * H, W * Cin), lambda n: (n, 0))]
    in_specs += [full_spec(a) for a in inputs[1:]]

    if proj:
        sel_sk = (wcol1 == s * vcol).astype(f32)
        wskp = jnp.einsum("cd,wv->wcvd", params["w_skip"].astype(f32), sel_sk)
        wskp = wskp.reshape(W * Cin, Wo * Cout).astype(bf16)
        sskt, bskt = lane_tile(params["s_skip"]), lane_tile(params["b_skip"])
        extra = [wskp, sskt, bskt]
        inputs += extra
        in_specs += [full_spec(a) for a in extra]

    inputs.append(kl)
    in_specs.append(pl.BlockSpec(memory_space=pltpu.MemorySpace.SMEM))

    kernel = functools.partial(_fused_block_kernel, H=H, Ho=Ho, stride=s,
                               proj=proj, nimg=B)

    out2d = pl.pallas_call(
        kernel,
        out_shape=jax.ShapeDtypeStruct((N * Ho, Wo * Cout), out_dtype),
        grid_spec=pltpu.PrefetchScalarGridSpec(
            num_scalar_prefetch=0,
            grid=grid,
            in_specs=in_specs,
            out_specs=pl.BlockSpec((B * Ho, Wo * Cout), lambda n: (n, 0))),
        compiler_params=pltpu.CompilerParams(
            dimension_semantics=("parallel",),        # batch-blocks split across TCs
            vmem_limit_bytes=32 * 1024 * 1024),
    )(*inputs)

    return out2d.reshape(N, Ho, Wo, Cout)


def resnet_block_basic(x_nchw, params, *, stride=1, k_l=1.0):
    """NCHW in / NCHW out, f32 output, to match the PyTorch module.  Prefer
    resnet_block_basic_nhwc (bf16 out) when chaining blocks."""
    x_nhwc = jnp.transpose(x_nchw, (0, 2, 3, 1))
    out = resnet_block_basic_nhwc(x_nhwc, params, stride=stride, k_l=k_l,
                                  out_dtype=jnp.float32)
    return jnp.transpose(out, (0, 3, 1, 2))


# ------------------------------------------------------------------
# Deterministic parameter init (synthetic; BN folded to scale/bias, eval mode)
# ------------------------------------------------------------------
def _bn_fold(keys, c, eps=1e-5):
    kg, kb, km, kv = keys
    gamma = 1.0 + 0.1 * jax.random.normal(kg, (c,), jnp.float32)
    beta = 0.1 * jax.random.normal(kb, (c,), jnp.float32)
    mean = 0.1 * jax.random.normal(km, (c,), jnp.float32)
    var = 1.0 + 0.1 * jnp.abs(jax.random.normal(kv, (c,), jnp.float32))
    scale = gamma / jnp.sqrt(var + eps)
    bias = beta - mean * scale
    return scale.reshape(1, c), bias.reshape(1, c)


def init_params(key, cin, cout):
    ks = jax.random.split(key, 16)
    w1 = 0.3 * jax.random.normal(ks[0], (3, 3, cin, cout), jnp.float32)     # HWIO
    s1, b1 = _bn_fold(ks[1:5], cout)
    w2 = 0.3 * jax.random.normal(ks[5], (3, 3, cout, cout), jnp.float32)    # HWIO
    s2, b2 = _bn_fold(ks[6:10], cout)
    if cin != cout:
        w_skip = 0.3 * jax.random.normal(ks[10], (cin, cout), jnp.float32)  # 1x1, IO
        s_skip, b_skip = _bn_fold(ks[11:15], cout)
    else:
        w_skip, s_skip, b_skip = None, None, None
    return dict(w1=w1, s1=s1, b1=b1, w2=w2, s2=s2, b2=b2,
                w_skip=w_skip, s_skip=s_skip, b_skip=b_skip)


# ------------------------------------------------------------------
# Pure-JAX reference (lax.conv), mirroring the kernel's bf16-input / f32-accum numerics
# ------------------------------------------------------------------
def reference(x_nchw, params, *, stride=1, k_l=1.0):
    bf16, f32 = jnp.bfloat16, jnp.float32
    x = jnp.transpose(x_nchw, (0, 2, 3, 1)).astype(bf16)
    dn = ("NHWC", "HWIO", "NHWC")
    y = lax.conv_general_dilated(x, params["w1"].astype(bf16), (stride, stride),
                                 ((1, 1), (1, 1)), dimension_numbers=dn,
                                 preferred_element_type=f32)
    y = jnp.maximum(y * params["s1"] + params["b1"], 0.0)
    y2 = lax.conv_general_dilated(y.astype(bf16), params["w2"].astype(bf16), (1, 1),
                                  ((1, 1), (1, 1)), dimension_numbers=dn,
                                  preferred_element_type=f32)
    y2 = y2 * params["s2"] + params["b2"]
    if params["w_skip"] is not None:
        cin, cout = params["w_skip"].shape
        wsk = params["w_skip"].astype(bf16).reshape(1, 1, cin, cout)
        skip = lax.conv_general_dilated(x, wsk, (stride, stride), ((0, 0), (0, 0)),
                                        dimension_numbers=dn,
                                        preferred_element_type=f32)
        skip = skip * params["s_skip"] + params["b_skip"]
    else:
        skip = x.astype(f32)
    out = jnp.maximum(y2 + k_l * skip, 0.0)
    return jnp.transpose(out, (0, 3, 1, 2))


if __name__ == "__main__":
    key = jax.random.PRNGKey(0)
    kx, kp = jax.random.split(key)

    N, Cin, H, W = 2, 4, 16, 16      # NCHW input, as in the PyTorch module
    Cout = 8                         # Cin != Cout -> exercises the projection skip
    stride = 1
    k_l = 0.5

    x = jax.random.normal(kx, (N, Cin, H, W), jnp.float32)
    params = init_params(kp, Cin, Cout)

    # NCHW / f32 path (matches PyTorch module output dtype) -- strict check.
    out = resnet_block_basic(x, params, stride=stride, k_l=k_l)
    out = jax.block_until_ready(out)

    ref = reference(x, params, stride=stride, k_l=k_l)
    ref = jax.block_until_ready(ref)

    assert out.shape == ref.shape == (N, Cout, H, W), (out.shape, ref.shape)
    assert jnp.allclose(out, ref, atol=2e-3, rtol=2e-3), \
        f"max abs err = {float(jnp.max(jnp.abs(out - ref)))}"

    # NHWC / bf16-output chaining path (halved HBM writeback) -- bf16-level check.
    x_nhwc = jnp.transpose(x, (0, 2, 3, 1))
    out_bf = resnet_block_basic_nhwc(x_nhwc, params, stride=stride, k_l=k_l)
    out_bf = jax.block_until_ready(out_bf)
    ref_nhwc = jnp.transpose(ref, (0, 2, 3, 1))
    assert jnp.allclose(out_bf.astype(jnp.float32), ref_nhwc, atol=3e-2, rtol=3e-2), \
        f"bf16 path max abs err = {float(jnp.max(jnp.abs(out_bf.astype(jnp.float32) - ref_nhwc)))}"

    print("KERNEL_OK")
</pallas_src>

<mosaic_0001>
module attributes {stable_mosaic.version = 11 : i64} {
  func.func @_fused_block_kernel(%arg0: i32, %arg1: memref<32x64xbf16, #tpu.memory_space<vmem>>, %arg2: memref<3x64x128xbf16, #tpu.memory_space<vmem>>, %arg3: memref<1x128xf32, #tpu.memory_space<vmem>>, %arg4: memref<1x128xf32, #tpu.memory_space<vmem>>, %arg5: memref<3x128x128xbf16, #tpu.memory_space<vmem>>, %arg6: memref<1x128xf32, #tpu.memory_space<vmem>>, %arg7: memref<1x128xf32, #tpu.memory_space<vmem>>, %arg8: memref<64x128xbf16, #tpu.memory_space<vmem>>, %arg9: memref<1x128xf32, #tpu.memory_space<vmem>>, %arg10: memref<1x128xf32, #tpu.memory_space<vmem>>, %arg11: memref<1xf32, #tpu.memory_space<smem>>, %arg12: memref<32x128xf32, #tpu.memory_space<vmem>>) attributes {dimension_semantics = [#tpu.dimension_semantics<parallel>], iteration_bounds = array<i64: 1>, scalar_prefetch = 0 : i64, scratch_operands = 0 : i64, tpu.core_type = #tpu.core_type<tc>, window_params = [{transform_indices = @transform_0, window_bounds = array<i64: 32, 64>}, {pipeline_mode = #tpu.pipeline_mode<synchronous>, transform_indices = @transform_1, window_bounds = array<i64: 3, 64, 128>}, {pipeline_mode = #tpu.pipeline_mode<synchronous>, transform_indices = @transform_2, window_bounds = array<i64: 1, 128>}, {pipeline_mode = #tpu.pipeline_mode<synchronous>, transform_indices = @transform_3, window_bounds = array<i64: 1, 128>}, {pipeline_mode = #tpu.pipeline_mode<synchronous>, transform_indices = @transform_4, window_bounds = array<i64: 3, 128, 128>}, {pipeline_mode = #tpu.pipeline_mode<synchronous>, transform_indices = @transform_5, window_bounds = array<i64: 1, 128>}, {pipeline_mode = #tpu.pipeline_mode<synchronous>, transform_indices = @transform_6, window_bounds = array<i64: 1, 128>}, {pipeline_mode = #tpu.pipeline_mode<synchronous>, transform_indices = @transform_7, window_bounds = array<i64: 64, 128>}, {pipeline_mode = #tpu.pipeline_mode<synchronous>, transform_indices = @transform_8, window_bounds = array<i64: 1, 128>}, {pipeline_mode = #tpu.pipeline_mode<synchronous>, transform_indices = @transform_9, window_bounds = array<i64: 1, 128>}, {transform_indices = @transform_10, window_bounds = array<i64: 1>}, {transform_indices = @transform_11, window_bounds = array<i64: 32, 128>}]} {
    %c0 = arith.constant 0 : index
    %c0_0 = arith.constant 0 : index
    %0 = vector.load %arg1[%c0, %c0_0] : memref<32x64xbf16, #tpu.memory_space<vmem>>, vector<32x64xbf16>
    %1 = arith.extf %0 : vector<32x64xbf16> to vector<32x64xf32>
    %2 = tpu.iota {dimensions = array<i32: 0>} : vector<32x1xi32>
    %c16_i32 = arith.constant 16 : i32
    %c0_i32 = arith.constant 0 : i32
    %3 = arith.cmpi eq, %c16_i32, %c0_i32 : i32
    %c1_i32 = arith.constant 1 : i32
    %4 = arith.select %3, %c1_i32, %c16_i32 : i32
    %5 = vector.broadcast %4 : i32 to vector<32x1xi32>
    %6 = arith.remsi %2, %5 : vector<32x1xi32>
    %c0_i32_1 = arith.constant 0 : i32
    %7 = vector.broadcast %c0_i32_1 : i32 to vector<32x1xi32>
    %8 = arith.cmpi ne, %6, %7 : vector<32x1xi32>
    %c0_i32_2 = arith.constant 0 : i32
    %9 = vector.broadcast %c0_i32_2 : i32 to vector<32x1xi32>
    %10 = arith.cmpi slt, %6, %9 : vector<32x1xi32>
    %c0_i32_3 = arith.constant 0 : i32
    %11 = arith.cmpi slt, %4, %c0_i32_3 : i32
    %12 = vector.broadcast %11 : i1 to vector<32x1xi1>
    %13 = vector.broadcast %12 : vector<32x1xi1> to vector<32x1xi1>
    %14 = arith.xori %10, %13 : vector<32x1xi1>
    %15 = arith.andi %14, %8 : vector<32x1xi1>
    %16 = vector.broadcast %4 : i32 to vector<32x1xi32>
    %17 = arith.addi %6, %16 : vector<32x1xi32>
    %18 = arith.select %15, %17, %6 : vector<32x1xi1>, vector<32x1xi32>
    %c1_i32_4 = arith.constant 1 : i32
    %19 = tpu.dynamic_rotate %1 by %c1_i32_4 dim 0 : vector<32x64xf32>, i32 -> vector<32x64xf32>
    %c1_i32_5 = arith.constant 1 : i32
    %20 = vector.broadcast %c1_i32_5 : i32 to vector<32x1xi32>
    %21 = arith.muli %20, %18 : vector<32x1xi32>
    %c1_i32_6 = arith.constant 1 : i32
    %22 = vector.broadcast %c1_i32_6 : i32 to vector<32x1xi32>
    %23 = arith.subi %21, %22 : vector<32x1xi32>
    %c0_i32_7 = arith.constant 0 : i32
    %24 = vector.broadcast %c0_i32_7 : i32 to vector<32x1xi32>
    %25 = arith.cmpi sge, %23, %24 : vector<32x1xi32>
    %cst = arith.constant 0.000000e+00 : f32
    %26 = vector.shape_cast %25 : vector<32x1xi1> to vector<32x1xi1>
    %27 = vector.broadcast %26 : vector<32x1xi1> to vector<32x64xi1>
    %28 = vector.broadcast %cst : f32 to vector<32x64xf32>
    %29 = arith.select %27, %19, %28 : vector<32x64xi1>, vector<32x64xf32>
    %30 = arith.truncf %29 : vector<32x64xf32> to vector<32x64xbf16>
    %c0_8 = arith.constant 0 : index
    %c0_9 = arith.constant 0 : index
    %c0_10 = arith.constant 0 : index
    %31 = vector.load %arg2[%c0_8, %c0_9, %c0_10] : memref<3x64x128xbf16, #tpu.memory_space<vmem>>, vector<1x64x128xbf16>
    %32 = vector.shape_cast %31 : vector<1x64x128xbf16> to vector<64x128xbf16>
    %cst_11 = arith.constant dense<0.000000e+00> : vector<32x128xf32>
    %33 = tpu.matmul %30, %32, %cst_11 {dimension_numbers = #tpu.dot_dimension_numbers<[1], [0], [0], [1], [0, 0, 1, 1], [], []>} : vector<32x64xbf16>, vector<64x128xbf16>, vector<32x128xf32> -> vector<32x128xf32>
    %34 = arith.truncf %1 : vector<32x64xf32> to vector<32x64xbf16>
    %c1 = arith.constant 1 : index
    %c0_12 = arith.constant 0 : index
    %c0_13 = arith.constant 0 : index
    %35 = vector.load %arg2[%c1, %c0_12, %c0_13] : memref<3x64x128xbf16, #tpu.memory_space<vmem>>, vector<1x64x128xbf16>
    %36 = vector.shape_cast %35 : vector<1x64x128xbf16> to vector<64x128xbf16>
    %cst_14 = arith.constant dense<0.000000e+00> : vector<32x128xf32>
    %37 = tpu.matmul %34, %36, %cst_14 {dimension_numbers = #tpu.dot_dimension_numbers<[1], [0], [0], [1], [0, 0, 1, 1], [], []>} : vector<32x64xbf16>, vector<64x128xbf16>, vector<32x128xf32> -> vector<32x128xf32>
    %38 = arith.addf %33, %37 : vector<32x128xf32>
    %c31_i32 = arith.constant 31 : i32
    %39 = tpu.dynamic_rotate %1 by %c31_i32 dim 0 : vector<32x64xf32>, i32 -> vector<32x64xf32>
    %c1_i32_15 = arith.constant 1 : i32
    %40 = vector.broadcast %c1_i32_15 : i32 to vector<32x1xi32>
    %41 = arith.muli %40, %18 : vector<32x1xi32>
    %c1_i32_16 = arith.constant 1 : i32
    %42 = vector.broadcast %c1_i32_16 : i32 to vector<32x1xi32>
    %43 = arith.addi %41, %42 : vector<32x1xi32>
    %c16_i32_17 = arith.constant 16 : i32
    %44 = vector.broadcast %c16_i32_17 : i32 to vector<32x1xi32>
    %45 = arith.cmpi slt, %43, %44 : vector<32x1xi32>
    %cst_18 = arith.constant 0.000000e+00 : f32
    %46 = vector.shape_cast %45 : vector<32x1xi1> to vector<32x1xi1>
    %47 = vector.broadcast %46 : vector<32x1xi1> to vector<32x64xi1>
    %48 = vector.broadcast %cst_18 : f32 to vector<32x64xf32>
    %49 = arith.select %47, %39, %48 : vector<32x64xi1>, vector<32x64xf32>
    %50 = arith.truncf %49 : vector<32x64xf32> to vector<32x64xbf16>
    %c2 = arith.constant 2 : index
    %c0_19 = arith.constant 0 : index
    %c0_20 = arith.constant 0 : index
    %51 = vector.load %arg2[%c2, %c0_19, %c0_20] : memref<3x64x128xbf16, #tpu.memory_space<vmem>>, vector<1x64x128xbf16>
    %52 = vector.shape_cast %51 : vector<1x64x128xbf16> to vector<64x128xbf16>
    %cst_21 = arith.constant dense<0.000000e+00> : vector<32x128xf32>
    %53 = tpu.matmul %50, %52, %cst_21 {dimension_numbers = #tpu.dot_dimension_numbers<[1], [0], [0], [1], [0, 0, 1, 1], [], []>} : vector<32x64xbf16>, vector<64x128xbf16>, vector<32x128xf32> -> vector<32x128xf32>
    %54 = arith.addf %38, %53 : vector<32x128xf32>
    %c0_22 = arith.constant 0 : index
    %c0_23 = arith.constant 0 : index
    %55 = vector.load %arg3[%c0_22, %c0_23] : memref<1x128xf32, #tpu.memory_space<vmem>>, vector<1x128xf32>
    %56 = vector.broadcast %55 : vector<1x128xf32> to vector<32x128xf32>
    %57 = arith.mulf %54, %56 : vector<32x128xf32>
    %c0_24 = arith.constant 0 : index
    %c0_25 = arith.constant 0 : index
    %58 = vector.load %arg4[%c0_24, %c0_25] : memref<1x128xf32, #tpu.memory_space<vmem>>, vector<1x128xf32>
    %59 = vector.broadcast %58 : vector<1x128xf32> to vector<32x128xf32>
    %60 = arith.addf %57, %59 : vector<32x128xf32>
    %cst_26 = arith.constant 0.000000e+00 : f32
    %61 = vector.broadcast %cst_26 : f32 to vector<32x128xf32>
    %62 = arith.maximumf %60, %61 : vector<32x128xf32>
    %63 = tpu.iota {dimensions = array<i32: 0>} : vector<32x1xi32>
    %c16_i32_27 = arith.constant 16 : i32
    %c0_i32_28 = arith.constant 0 : i32
    %64 = arith.cmpi eq, %c16_i32_27, %c0_i32_28 : i32
    %c1_i32_29 = arith.constant 1 : i32
    %65 = arith.select %64, %c1_i32_29, %c16_i32_27 : i32
    %66 = vector.broadcast %65 : i32 to vector<32x1xi32>
    %67 = arith.remsi %63, %66 : vector<32x1xi32>
    %c0_i32_30 = arith.constant 0 : i32
    %68 = vector.broadcast %c0_i32_30 : i32 to vector<32x1xi32>
    %69 = arith.cmpi ne, %67, %68 : vector<32x1xi32>
    %c0_i32_31 = arith.constant 0 : i32
    %70 = vector.broadcast %c0_i32_31 : i32 to vector<32x1xi32>
    %71 = arith.cmpi slt, %67, %70 : vector<32x1xi32>
    %c0_i32_32 = arith.constant 0 : i32
    %72 = arith.cmpi slt, %65, %c0_i32_32 : i32
    %73 = vector.broadcast %72 : i1 to vector<32x1xi1>
    %74 = vector.broadcast %73 : vector<32x1xi1> to vector<32x1xi1>
    %75 = arith.xori %71, %74 : vector<32x1xi1>
    %76 = arith.andi %75, %69 : vector<32x1xi1>
    %77 = vector.broadcast %65 : i32 to vector<32x1xi32>
    %78 = arith.addi %67, %77 : vector<32x1xi32>
    %79 = arith.select %76, %78, %67 : vector<32x1xi1>, vector<32x1xi32>
    %c1_i32_33 = arith.constant 1 : i32
    %80 = tpu.dynamic_rotate %62 by %c1_i32_33 dim 0 : vector<32x128xf32>, i32 -> vector<32x128xf32>
    %c1_i32_34 = arith.constant 1 : i32
    %81 = vector.broadcast %c1_i32_34 : i32 to vector<32x1xi32>
    %82 = arith.muli %81, %79 : vector<32x1xi32>
    %c1_i32_35 = arith.constant 1 : i32
    %83 = vector.broadcast %c1_i32_35 : i32 to vector<32x1xi32>
    %84 = arith.subi %82, %83 : vector<32x1xi32>
    %c0_i32_36 = arith.constant 0 : i32
    %85 = vector.broadcast %c0_i32_36 : i32 to vector<32x1xi32>
    %86 = arith.cmpi sge, %84, %85 : vector<32x1xi32>
    %cst_37 = arith.constant 0.000000e+00 : f32
    %87 = vector.shape_cast %86 : vector<32x1xi1> to vector<32x1xi1>
    %88 = vector.broadcast %87 : vector<32x1xi1> to vector<32x128xi1>
    %89 = vector.broadcast %cst_37 : f32 to vector<32x128xf32>
    %90 = arith.select %88, %80, %89 : vector<32x128xi1>, vector<32x128xf32>
    %91 = arith.truncf %90 : vector<32x128xf32> to vector<32x128xbf16>
    %c0_38 = arith.constant 0 : index
    %c0_39 = arith.constant 0 : index
    %c0_40 = arith.constant 0 : index
    %92 = vector.load %arg5[%c0_38, %c0_39, %c0_40] : memref<3x128x128xbf16, #tpu.memory_space<vmem>>, vector<1x128x128xbf16>
    %93 = vector.shape_cast %92 : vector<1x128x128xbf16> to vector<128x128xbf16>
    %cst_41 = arith.constant dense<0.000000e+00> : vector<32x128xf32>
    %94 = tpu.matmul %91, %93, %cst_41 {dimension_numbers = #tpu.dot_dimension_numbers<[1], [0], [0], [1], [0, 0, 1, 1], [], []>} : vector<32x128xbf16>, vector<128x128xbf16>, vector<32x128xf32> -> vector<32x128xf32>
    %95 = arith.truncf %62 : vector<32x128xf32> to vector<32x128xbf16>
    %c1_42 = arith.constant 1 : index
    %c0_43 = arith.constant 0 : index
    %c0_44 = arith.constant 0 : index
    %96 = vector.load %arg5[%c1_42, %c0_43, %c0_44] : memref<3x128x128xbf16, #tpu.memory_space<vmem>>, vector<1x128x128xbf16>
    %97 = vector.shape_cast %96 : vector<1x128x128xbf16> to vector<128x128xbf16>
    %cst_45 = arith.constant dense<0.000000e+00> : vector<32x128xf32>
    %98 = tpu.matmul %95, %97, %cst_45 {dimension_numbers = #tpu.dot_dimension_numbers<[1], [0], [0], [1], [0, 0, 1, 1], [], []>} : vector<32x128xbf16>, vector<128x128xbf16>, vector<32x128xf32> -> vector<32x128xf32>
    %99 = arith.addf %94, %98 : vector<32x128xf32>
    %c31_i32_46 = arith.constant 31 : i32
    %100 = tpu.dynamic_rotate %62 by %c31_i32_46 dim 0 : vector<32x128xf32>, i32 -> vector<32x128xf32>
    %c1_i32_47 = arith.constant 1 : i32
    %101 = vector.broadcast %c1_i32_47 : i32 to vector<32x1xi32>
    %102 = arith.muli %101, %79 : vector<32x1xi32>
    %c1_i32_48 = arith.constant 1 : i32
    %103 = vector.broadcast %c1_i32_48 : i32 to vector<32x1xi32>
    %104 = arith.addi %102, %103 : vector<32x1xi32>
    %c16_i32_49 = arith.constant 16 : i32
    %105 = vector.broadcast %c16_i32_49 : i32 to vector<32x1xi32>
    %106 = arith.cmpi slt, %104, %105 : vector<32x1xi32>
    %cst_50 = arith.constant 0.000000e+00 : f32
    %107 = vector.shape_cast %106 : vector<32x1xi1> to vector<32x1xi1>
    %108 = vector.broadcast %107 : vector<32x1xi1> to vector<32x128xi1>
    %109 = vector.broadcast %cst_50 : f32 to vector<32x128xf32>
    %110 = arith.select %108, %100, %109 : vector<32x128xi1>, vector<32x128xf32>
    %111 = arith.truncf %110 : vector<32x128xf32> to vector<32x128xbf16>
    %c2_51 = arith.constant 2 : index
    %c0_52 = arith.constant 0 : index
    %c0_53 = arith.constant 0 : index
    %112 = vector.load %arg5[%c2_51, %c0_52, %c0_53] : memref<3x128x128xbf16, #tpu.memory_space<vmem>>, vector<1x128x128xbf16>
    %113 = vector.shape_cast %112 : vector<1x128x128xbf16> to vector<128x128xbf16>
    %cst_54 = arith.constant dense<0.000000e+00> : vector<32x128xf32>
    %114 = tpu.matmul %111, %113, %cst_54 {dimension_numbers = #tpu.dot_dimension_numbers<[1], [0], [0], [1], [0, 0, 1, 1], [], []>} : vector<32x128xbf16>, vector<128x128xbf16>, vector<32x128xf32> -> vector<32x128xf32>
    %115 = arith.addf %99, %114 : vector<32x128xf32>
    %c0_55 = arith.constant 0 : index
    %c0_56 = arith.constant 0 : index
    %116 = vector.load %arg6[%c0_55, %c0_56] : memref<1x128xf32, #tpu.memory_space<vmem>>, vector<1x128xf32>
    %117 = vector.broadcast %116 : vector<1x128xf32> to vector<32x128xf32>
    %118 = arith.mulf %115, %117 : vector<32x128xf32>
    %c0_57 = arith.constant 0 : index
    %c0_58 = arith.constant 0 : index
    %119 = vector.load %arg7[%c0_57, %c0_58] : memref<1x128xf32, #tpu.memory_space<vmem>>, vector<1x128xf32>
    %120 = vector.broadcast %119 : vector<1x128xf32> to vector<32x128xf32>
    %121 = arith.addf %118, %120 : vector<32x128xf32>
    %122 = arith.truncf %1 : vector<32x64xf32> to vector<32x64xbf16>
    %c0_59 = arith.constant 0 : index
    %c0_60 = arith.constant 0 : index
    %123 = vector.load %arg8[%c0_59, %c0_60] : memref<64x128xbf16, #tpu.memory_space<vmem>>, vector<64x128xbf16>
    %cst_61 = arith.constant dense<0.000000e+00> : vector<32x128xf32>
    %124 = tpu.matmul %122, %123, %cst_61 {dimension_numbers = #tpu.dot_dimension_numbers<[1], [0], [0], [1], [0, 0, 1, 1], [], []>} : vector<32x64xbf16>, vector<64x128xbf16>, vector<32x128xf32> -> vector<32x128xf32>
    %c0_62 = arith.constant 0 : index
    %c0_63 = arith.constant 0 : index
    %125 = vector.load %arg9[%c0_62, %c0_63] : memref<1x128xf32, #tpu.memory_space<vmem>>, vector<1x128xf32>
    %126 = vector.broadcast %125 : vector<1x128xf32> to vector<32x128xf32>
    %127 = arith.mulf %124, %126 : vector<32x128xf32>
    %c0_64 = arith.constant 0 : index
    %c0_65 = arith.constant 0 : index
    %128 = vector.load %arg10[%c0_64, %c0_65] : memref<1x128xf32, #tpu.memory_space<vmem>>, vector<1x128xf32>
    %129 = vector.broadcast %128 : vector<1x128xf32> to vector<32x128xf32>
    %130 = arith.addf %127, %129 : vector<32x128xf32>
    %c0_66 = arith.constant 0 : index
    %131 = memref.load %arg11[%c0_66] : memref<1xf32, #tpu.memory_space<smem>>
    %132 = vector.broadcast %131 : f32 to vector<32x128xf32>
    %133 = arith.mulf %132, %130 : vector<32x128xf32>
    %134 = arith.addf %121, %133 : vector<32x128xf32>
    %cst_67 = arith.constant 0.000000e+00 : f32
    %135 = vector.broadcast %cst_67 : f32 to vector<32x128xf32>
    %136 = arith.maximumf %134, %135 : vector<32x128xf32>
    %c0_68 = arith.constant 0 : index
    %c0_69 = arith.constant 0 : index
    %137 = vector.load %arg12[%c0_68, %c0_69] : memref<32x128xf32, #tpu.memory_space<vmem>>, vector<32x128xf32>
    tpu.vector_store %arg12[%c0_68, %c0_69], %136 {strides = array<i32>} : memref<32x128xf32, #tpu.memory_space<vmem>>, vector<32x128xf32>,
    return
  }
  func.func @transform_0(%arg0: i32) -> (i32, i32) {
    %c0_i32 = arith.constant 0 : i32
    %c0_i32_0 = arith.constant 0 : i32
    return %arg0, %c0_i32 : i32, i32
  }
  func.func @transform_1(%arg0: i32) -> (i32, i32, i32) {
    %c0_i32 = arith.constant 0 : i32
    %c0_i32_0 = arith.constant 0 : i32
    %c0_i32_1 = arith.constant 0 : i32
    %c0_i32_2 = arith.constant 0 : i32
    return %c0_i32, %c0_i32_0, %c0_i32_1 : i32, i32, i32
  }
  func.func @transform_2(%arg0: i32) -> (i32, i32) {
    %c0_i32 = arith.constant 0 : i32
    %c0_i32_0 = arith.constant 0 : i32
    %c0_i32_1 = arith.constant 0 : i32
    return %c0_i32, %c0_i32_0 : i32, i32
  }
  func.func @transform_3(%arg0: i32) -> (i32, i32) {
    %c0_i32 = arith.constant 0 : i32
    %c0_i32_0 = arith.constant 0 : i32
    %c0_i32_1 = arith.constant 0 : i32
    return %c0_i32, %c0_i32_0 : i32, i32
  }
  func.func @transform_4(%arg0: i32) -> (i32, i32, i32) {
    %c0_i32 = arith.constant 0 : i32
    %c0_i32_0 = arith.constant 0 : i32
    %c0_i32_1 = arith.constant 0 : i32
    %c0_i32_2 = arith.constant 0 : i32
    return %c0_i32, %c0_i32_0, %c0_i32_1 : i32, i32, i32
  }
  func.func @transform_5(%arg0: i32) -> (i32, i32) {
    %c0_i32 = arith.constant 0 : i32
    %c0_i32_0 = arith.constant 0 : i32
    %c0_i32_1 = arith.constant 0 : i32
    return %c0_i32, %c0_i32_0 : i32, i32
  }
  func.func @transform_6(%arg0: i32) -> (i32, i32) {
    %c0_i32 = arith.constant 0 : i32
    %c0_i32_0 = arith.constant 0 : i32
    %c0_i32_1 = arith.constant 0 : i32
    return %c0_i32, %c0_i32_0 : i32, i32
  }
  func.func @transform_7(%arg0: i32) -> (i32, i32) {
    %c0_i32 = arith.constant 0 : i32
    %c0_i32_0 = arith.constant 0 : i32
    %c0_i32_1 = arith.constant 0 : i32
    return %c0_i32, %c0_i32_0 : i32, i32
  }
  func.func @transform_8(%arg0: i32) -> (i32, i32) {
    %c0_i32 = arith.constant 0 : i32
    %c0_i32_0 = arith.constant 0 : i32
    %c0_i32_1 = arith.constant 0 : i32
    return %c0_i32, %c0_i32_0 : i32, i32
  }
  func.func @transform_9(%arg0: i32) -> (i32, i32) {
    %c0_i32 = arith.constant 0 : i32
    %c0_i32_0 = arith.constant 0 : i32
    %c0_i32_1 = arith.constant 0 : i32
    return %c0_i32, %c0_i32_0 : i32, i32
  }
  func.func @transform_10(%arg0: i32) -> i32 {
    %c0_i32 = arith.constant 0 : i32
    %c0_i32_0 = arith.constant 0 : i32
    return %c0_i32 : i32
  }
  func.func @transform_11(%arg0: i32) -> (i32, i32) {
    %c0_i32 = arith.constant 0 : i32
    %c0_i32_0 = arith.constant 0 : i32
    return %arg0, %c0_i32 : i32, i32
  }
}

</mosaic_0001>

<bundles_post_ra>
// kernel: tpu_custom_call.1
= control target key start
LH: loop header
LB: loop body
LE: loop exit
PB: predicated region body
PF: predicated region fallthrough
CT: control target
= control target key end

     0   :  { %17 = vsyncpa [#allocation4], 0  ;;  %s1414_s0 = inlined_call_operand.hbm [shape: bf16[32,64], index: 0, kind: input, shape index: {}]   ;;  %s1415_s1 = inlined_call_operand.hbm [shape: bf16[3,64,128], index: 1, kind: input, shape index: {}]   ;;  %s1416_s2 = inlined_call_operand.vmem [shape: f32[1,128], index: 2, kind: input, shape index: {}]   ;;  %s1417_s3 = inlined_call_operand.vmem [shape: f32[1,128], index: 3, kind: input, shape index: {}]   ;;  %s1418_s4 = inlined_call_operand.hbm [shape: bf16[3,128,128], index: 4, kind: input, shape index: {}]   ;;  %s1419_s5 = inlined_call_operand.vmem [shape: f32[1,128], index: 5, kind: input, shape index: {}]   ;;  %s1420_s6 = inlined_call_operand.vmem [shape: f32[1,128], index: 6, kind: input, shape index: {}]   ;;  %s1421_s7 = inlined_call_operand.hbm [shape: bf16[64,128], index: 7, kind: input, shape index: {}]   ;;  %s1422_s8 = inlined_call_operand.vmem [shape: f32[1,128], index: 8, kind: input, shape index: {}]   ;;  %s1423_s9 = inlined_call_operand.vmem [shape: f32[1,128], index: 9, kind: input, shape index: {}]   ;;  %s1424_s10 = inlined_call_operand.<no memory space> [shape: f32[1], index: 10, kind: input, shape index: {}]   ;;  %s1425_s11 = inlined_call_operand.hbm [shape: f32[32,128], index: 11, kind: output, shape index: {}]  }
   0x1   :  { %18 = vsyncpa [#allocation7], 0 }
   0x2   :  { %19 = vsyncpa [#allocation10], 0 }
   0x3   :  { %20 = vsyncpa [#allocation5], 0  ;;  %s38_s19 = sshll.u32 %s1415_s1, 4  ;;  %s1220_s20 = smov [#allocation6]   ;;  %s39_s19 = int_to_ptr.hbm [resolvable:$true] %s38_s19 }
   0x4   :  { %s40_s21 = sshll.u32 %s1220_s20, 4  ;;  %s25_s24 = sshll.u32 %s1414_s0, 4  ;;  %s41_s21 = int_to_ptr.vmem [resolvable:$true] %s40_s21  ;;  %s26_s24 = int_to_ptr.hbm [resolvable:$true] %s25_s24 }
   0x5   :  { %s1221_s25 = smov 64   ;;  %s1222_s26 = smov 4  }
   0x6   :  { %46 = dma.hbm_to_vmem [thread:$0]  %s39_s19, 1536, %s41_s21, [#allocation7], %s1221_s25, %s1221_s25, %s1222_s26  }
   0x7   :  { %s1223_s27 = smov [#allocation3]   ;;  %s55_s12 = sshll.u32 %s1418_s4, 4  ;;  %s56_s12 = int_to_ptr.hbm [resolvable:$true] %s55_s12 }
   0x8   :  { %s27_s28 = sshll.u32 %s1223_s27, 4  ;;  %s72_s14 = sshll.u32 %s1421_s7, 4  ;;  %s28_s28 = int_to_ptr.vmem [resolvable:$true] %s27_s28  ;;  %s73_s14 = int_to_ptr.hbm [resolvable:$true] %s72_s14 }
   0x9   :  { %33 = dma.hbm_to_vmem [thread:$0]  %s26_s24, 256, %s28_s28, [#allocation4], %s1221_s25, %s1221_s25, %s1222_s26  }
   0xa   :  { %s1224_s15 = smov [#allocation8]   ;;  %s1225_s0 = smov [#allocation9]  }
   0xb   :  { %s57_s16 = sshll.u32 %s1224_s15, 4  ;;  %s74_s17 = sshll.u32 %s1225_s0, 4  ;;  %s58_s16 = int_to_ptr.vmem [resolvable:$true] %s57_s16  ;;  %s75_s17 = int_to_ptr.vmem [resolvable:$true] %s74_s17 }
   0xc   :  { %63 = dma.hbm_to_vmem [thread:$0]  %s56_s12, 3072, %s58_s16, [#allocation7], %s1221_s25, %s1221_s25, %s1222_s26  }
   0xd   :  { %80 = dma.hbm_to_vmem [thread:$0]  %s73_s14, 512, %s75_s17, [#allocation10], %s1221_s25, %s1221_s25, %s1222_s26  }
   0xe   :  { %1212 = dma.done.wait [#allocation4], 256  }
   0xf   :  { %1213 = vsyncadd [#allocation4], 4294967040 }
  0x10   :  { %1214 = dma.done.wait [#allocation7], 4608  }
  0x11   :  { %1215 = vsyncadd [#allocation7], 4294962688 }
  0x12   :  { %1216 = dma.done.wait [#allocation10], 512  }
  0x13   :  { %1217 = vsyncadd [#allocation10], 4294966784  ;;  %v112_v0 = vlaneseq  ;;  %v1043_v4 = vld [vmem:[#allocation6 + $0x38] sm:$0xff]  ;;  %v1042_v9 = vld [vmem:[#allocation6 + $0x30] sm:$0xff]  ;;  %vm247_vm4 = vcmask 523264   ;;  %vm1226_vm7 = vmmov 1  }
  0x14   :  { %v1039_v5 = vld [vmem:[#allocation6 + $0x18] sm:$0xff]  ;;  %258 = vmatpush.bf16.msra.mxu0 %v1043_v4  ;;  %v1038_v10 = vld [vmem:[#allocation6 + $0x10] sm:$0xff]  ;;  %v1041_v12 = vld [vmem:[#allocation6 + $0x28] sm:$0xff]  ;;  %s827_s27 = sshll.u32 %s1425_s11, 4  ;;  %s1228_s28 = smov 128   ;;  %s828_s27 = int_to_ptr.hbm [resolvable:$true] %s827_s27 }
  0x15   :  { %v1302_v1 = vshrl.u32 %v112_v0, 7  ;;  %v1047_v6 = vld [vmem:[#allocation6 + $0x58] sm:$0xff]  ;;  %307 = vmatpush.bf16.msra.mxu1 %v1039_v5  ;;  %v1046_v11 = vld [vmem:[#allocation6 + $0x50] sm:$0xff]  ;;  %v1037_v13 = vld [vmem:[#allocation6 + $0x8] sm:$0xff]  ;;  %s1229_s29 = smov 8  }
  0x16   :  { %396 = vmatpush.bf16.msra.mxu2 %v1047_v6  ;;  %v104_v14 = vld [vmem:[#allocation3] sm:$0xff]   ;;  %v107_v15 = vld [vmem:[#allocation3 + $0x8] sm:$0xff]   ;;  %v1045_v17 = vld [vmem:[#allocation6 + $0x48] sm:$0xff] }
  0x17   :  { %v121_v2 = vand.u32 15, %v1302_v1  ;;  %v114_v3 = vadd.s32 8, %v1302_v1  ;;  %vm169_vm0 = vcmp.lt.s32.totalorder %v1302_v1, 1  ;;  %vm326_vm2 = vcmp.lt.s32.totalorder %v1302_v1, 7  ;;  %v1063_v22 = vld [vmem:[#allocation8 + $0x78] sm:$0xff]  ;;  %v1062_v23 = vld [vmem:[#allocation8 + $0x70] sm:$0xff] }
  0x18   :  { %v108_v18 = vunpack.c.l.bf16 %v104_v14  ;;  %v109_v19 = vunpack.c.h.bf16 %v104_v14  ;;  %v111_v20 = vunpack.c.h.bf16 %v107_v15  ;;  %v110_v21 = vunpack.c.l.bf16 %v107_v15  ;;  %259 = vmatpush.bf16.msra.mxu0 %v1042_v9  ;;  %532 = vmatpush.bf16.msra.mxu3 %v1063_v22  ;;  %v1040_v31 = vld [vmem:[#allocation6 + $0x20] sm:$0xff]  ;;  %v1328_v41 = vld [vmem:[#allocation3] sm:$0xff]  ;;  %v1352_v56 = vld [vmem:[#allocation3 + $0x8] sm:$0xff] }
  0x19   :  { %v1306_v7 = vadd.s32 4294967295, %v121_v2  ;;  %v128_v8 = vand.u32 15, %v114_v3  ;;  %308 = vmatpush.bf16.msra.mxu1 %v1038_v10  ;;  %v1036_v32 = vld [vmem:[#allocation6] sm:$0xff]  ;;  %v115_v39 = vadd.s32 16, %v1302_v1  ;;  %v116_v40 = vadd.s32 24, %v1302_v1  ;;  %v1061_v59 = vld [vmem:[#allocation8 + $0x68] sm:$0xff] }
  0x1a   :  { %397 = vmatpush.bf16.msra.mxu2 %v1046_v11  ;;  %v165_v24 = vrot.slane %v108_v18, 7  ;;  %v166_v25 = vrot.slane %v109_v19, 7  ;;  %v168_v26 = vrot.slane %v111_v20, 7  ;;  %v322_v27 = vrot.slane %v108_v18, 1  ;;  %v1044_v36 = vld [vmem:[#allocation6 + $0x40] sm:$0xff]  ;;  %v1071_v60 = vld [vmem:[#allocation8 + $0xb8] sm:$0xff] }
  0x1b   :  { %vm178_vm1 = vcmp.ge.s32.totalorder %v1306_v7, 0  ;;  %v1311_v16 = vadd.s32 1, %v128_v8  ;;  %v323_v28 = vrot.slane %v109_v19, 1  ;;  %v324_v29 = vrot.slane %v110_v21, 1  ;;  %v1060_v61 = vld [vmem:[#allocation8 + $0x60] sm:$0xff]  ;;  %v1070_v62 = vld [vmem:[#allocation8 + $0xb0] sm:$0xff] }
  0x1c   :  { %v173_v30 = vsel %vm169_vm0, %v168_v26, %v165_v24  ;;  %260 = vmatpush.bf16.msra.mxu0 %v1041_v12  ;;  %v172_v33 = vsel %vm169_vm0, %v165_v24, %v166_v25  ;;  %533 = vmatpush.bf16.msra.mxu3 %v1062_v23  ;;  %v135_v44 = vand.u32 15, %v115_v39  ;;  %v142_v45 = vand.u32 15, %v116_v40  ;;  %v1059_v63 = vld [vmem:[#allocation8 + $0x58] sm:$0xff]  ;;  %v1069_v2 = vld [vmem:[#allocation8 + $0xa8] sm:$0xff]  ;;  %v1058_v3 = vld [vmem:[#allocation8 + $0x50] sm:$0xff] }
  0x1d   :  { %vm336_vm3 = vcmp.lt.s32.totalorder %v1311_v16, 16  ;;  %309 = vmatpush.bf16.msra.mxu1 %v1037_v13  ;;  %v190_v34 = vsel %vm178_vm1, %v173_v30, 0.0  ;;  %v328_v35 = vsel %vm326_vm2, %v323_v28, %v324_v29  ;;  %v329_v37 = vsel %vm326_vm2, %v322_v27, %v323_v28  ;;  %v1055_v0 = vld [vmem:[#allocation8 + $0x38] sm:$0xff]  ;;  %v1054_v5 = vld [vmem:[#allocation8 + $0x30] sm:$0xff]  ;;  %v1068_v6 = vld [vmem:[#allocation8 + $0xa0] sm:$0xff] }
  0x1e   :  { %398 = vmatpush.bf16.msra.mxu2 %v1045_v17  ;;  %v348_v38 = vsel %vm336_vm3, %v328_v35, 0.0  ;;  %v194_v42 = vpack.c.bf16 %v172_v33, %v190_v34  ;;  %v167_v46 = vrot.slane %v110_v21, 7  ;;  %v1334_v47 = vadd.s32 4294967295, %v135_v44  ;;  %v1075_v4 = vld [vmem:[#allocation9 + $0x18] sm:$0xff]  ;;  %v1057_v8 = vld [vmem:[#allocation8 + $0x48] sm:$0xff]  ;;  %v1074_v9 = vld [vmem:[#allocation9 + $0x10] sm:$0xff] }
  0x1f   :  { %v351_v43 = vpack.c.bf16 %v348_v38, %v329_v37  ;;  %v325_v48 = vrot.slane %v111_v20, 1  ;;  %v1336_v49 = vadd.s32 1, %v142_v45  ;;  %v1053_v10 = vld [vmem:[#allocation8 + $0x28] sm:$0xff]  ;;  %v1067_v11 = vld [vmem:[#allocation8 + $0x98] sm:$0xff]  ;;  %v1056_v12 = vld [vmem:[#allocation8 + $0x40] sm:$0xff] }
  0x20   :  { %261 = vmatpush.bf16.msra.mxu0 %v1040_v31  ;;  %v171_v50 = vsel %vm169_vm0, %v166_v25, %v167_v46  ;;  %vm180_vm5 = vcmp.ge.s32.totalorder %v1334_v47, 0  ;;  %v170_v52 = vsel %vm169_vm0, %v167_v46, %v168_v26  ;;  %534 = vmatpush.bf16.msra.mxu3 %v1061_v59  ;;  %v1052_v13 = vld [vmem:[#allocation8 + $0x20] sm:$0xff]  ;;  %v1073_v14 = vld [vmem:[#allocation9 + $0x8] sm:$0xff]  ;;  %v1066_v15 = vld [vmem:[#allocation8 + $0x90] sm:$0xff] }
  0x21   :  { %310 = vmatpush.bf16.msra.mxu1 %v1036_v32  ;;  %v330_v51 = vsel %vm326_vm2, %v325_v48, %v322_v27  ;;  %vm338_vm6 = vcmp.lt.s32.totalorder %v1336_v49, 16  ;;  %v192_v53 = vsel %vm180_vm5, %v171_v50, 0.0  ;;  %v327_v54 = vsel %vm326_vm2, %v324_v29, %v325_v48  ;;  %v1051_v17 = vld [vmem:[#allocation8 + $0x18] sm:$0xff]  ;;  %v1065_v18 = vld [vmem:[#allocation8 + $0x88] sm:$0xff]  ;;  %v1072_v19 = vld [vmem:[#allocation9] sm:$0xff] }
  0x22   :  { %399 = vmatpush.bf16.msra.mxu2 %v1044_v36  ;;  %v350_v55 = vsel %vm338_vm6, %v330_v51, 0.0  ;;  %v195_v57 = vpack.c.bf16 %v170_v52, %v192_v53  ;;  %v1050_v22 = vld [vmem:[#allocation8 + $0x10] sm:$0xff]  ;;  %v1064_v23 = vld [vmem:[#allocation8 + $0x80] sm:$0xff]  ;;  %v1049_v24 = vld [vmem:[#allocation8 + $0x8] sm:$0xff] }
  0x23   :  { %870 = vmatmul.msk.bf16.vlgmr.msra.gmra.mxu0 %vm247_vm4, %v1328_v41  ;;  %v352_v58 = vpack.c.bf16 %v350_v55, %v327_v54  ;;  %v1048_v29 = vld [vmem:[#allocation8] sm:$0xff]  ;;  %v1086_v31 = vld [vmem:[%s1416_s2] ss:$0 sm:$0xff]  ;;  %vm1010_vm8 = vmpackc.low %vm336_vm3, %vm1226_vm7 }
  0x24   :  { %888 = vmatmul.msk.bf16.vlgmr.msra.gmra.mxu1 %vm247_vm4, %v194_v42  ;;  %535 = vmatpush.bf16.msra.mxu3 %v1060_v61  ;;  %v1087_v33 = vld [vmem:[%s1417_s3] ss:$0 sm:$0xff]  ;;  %vm972_vm9 = vmpackc.low %vm1226_vm7, %vm178_vm1 }
  0x25   :  { %906 = vmatmul.msk.bf16.vlgmr.msra.gmra.mxu2 %vm247_vm4, %v351_v43  ;;  %697 = vmatpush.bf16.msrb.mxu1 %v1071_v60  ;;  %vm1013_vm10 = vmpackc.low %vm338_vm6, %vm1226_vm7  ;;  %v1088_v49 = vld [vmem:[%s1422_s8] ss:$0 sm:$0xff] }
  0x26   :  { %599 = vmatpush.bf16.msrb.mxu0 %v1055_v0  ;;  %772 = vmatpush.bf16.msrb.mxu2 %v1075_v4  ;;  %vm975_vm11 = vmpackc.low %vm1226_vm7, %vm180_vm5 }
  0x28   :  { %536 = vmatpush.bf16.msra.mxu3 %v1059_v63 }
  0x29   :  { %698 = vmatpush.bf16.msrb.mxu1 %v1070_v62 }
  0x2a   :  { %600 = vmatpush.bf16.msrb.mxu0 %v1054_v5  ;;  %773 = vmatpush.bf16.msrb.mxu2 %v1074_v9 }
  0x2c   :  { %537 = vmatpush.bf16.msra.mxu3 %v1058_v3 }
  0x2d   :  { %699 = vmatpush.bf16.msrb.mxu1 %v1069_v2 }
  0x2e   :  { %601 = vmatpush.bf16.msrb.mxu0 %v1053_v10  ;;  %774 = vmatpush.bf16.msrb.mxu2 %v1073_v14 }
  0x30   :  { %538 = vmatpush.bf16.msra.mxu3 %v1057_v8 }
  0x31   :  { %700 = vmatpush.bf16.msrb.mxu1 %v1068_v6 }
  0x32   :  { %602 = vmatpush.bf16.msrb.mxu0 %v1052_v13  ;;  %775 = vmatpush.bf16.msrb.mxu2 %v1072_v19 }
  0x33   :  { %871 = vmatmul.msk.bf16.gmra.mxu0 %vm247_vm4, %v1352_v56 }
  0x34   :  { %889 = vmatmul.msk.bf16.gmra.mxu1 %vm247_vm4, %v195_v57  ;;  %539 = vmatpush.bf16.msra.mxu3 %v1056_v12 }
  0x35   :  { %907 = vmatmul.msk.bf16.gmra.mxu2 %vm247_vm4, %v352_v58  ;;  %701 = vmatpush.bf16.msrb.mxu1 %v1067_v11 }
  0x36   :  { %603 = vmatpush.bf16.msrb.mxu0 %v1051_v17 }
  0x39   :  { %702 = vmatpush.bf16.msrb.mxu1 %v1066_v15 }
  0x3a   :  { %604 = vmatpush.bf16.msrb.mxu0 %v1050_v22 }
  0x3d   :  { %703 = vmatpush.bf16.msrb.mxu1 %v1065_v18 }
  0x3e   :  { %605 = vmatpush.bf16.msrb.mxu0 %v1049_v24 }
  0x41   :  { %704 = vmatpush.bf16.msrb.mxu1 %v1064_v23  ;;  %v1089_v23 = vld [vmem:[%s1423_s9] ss:$0 sm:$0xff] }
  0x42   :  { %606 = vmatpush.bf16.msrb.mxu0 %v1048_v29  ;;  %v1091_v29 = vld [vmem:[%s1420_s6] ss:$0 sm:$0xff] }
  0x45   :  { %1032 = vmatmul.msk.bf16.vlgmr.msrb.gmra.mxu2 %vm247_vm4, %v1328_v41 }
  0x55   :  { %1033 = vmatmul.msk.bf16.gmra.mxu2 %vm247_vm4, %v1352_v56 }
  0xa0   :  { %v263_v20 = vpop.f32.mrf.mxu0 }
  0xa1   :  { %v312_v21 = vpop.f32.mrf.mxu1 }
  0xa2   :  { %v313_v25 = vadd.f32 %v312_v21, %v263_v20 }
  0xa8   :  { %v401_v26 = vpop.f32.mrf.mxu2  ;;  %v265_v27 = vpop.f32.mrf.mxu0 }
  0xa9   :  { %v314_v28 = vpop.f32.mrf.mxu1  ;;  %v411_v30 = vadd.f32 %v401_v26, %v313_v25  ;;  %v1090_v26 = vld [vmem:[%s1419_s5] ss:$0 sm:$0xff]  ;;  %s1227_s5 = smov [#allocation11]  }
  0xaa   :  { %v315_v34 = vadd.f32 %v314_v28, %v265_v27  ;;  %v804_v27 = vstv %s1424_s10  ;;  %s825_s6 = sshll.u32 %s1227_s5, 4  ;;  %s826_s6 = int_to_ptr.vmem [resolvable:$true] %s825_s6 }
  0xab   :  { %v419_v32 = vmul.f32 %v1086_v31, %v411_v30 }
  0xad   :  { %v427_v39 = vadd.f32 %v1087_v33, %v419_v32 }
  0xaf   :  { %v431_v43 = vmax.f32 %v427_v39, 0.0 }
  0xb0   :  { %v403_v35 = vpop.f32.mrf.mxu2  ;;  %v268_v37 = vpop.f32.mrf.mxu0 }
  0xb1   :  { %v412_v36 = vadd.f32 %v403_v35, %v315_v34  ;;  %v317_v38 = vpop.f32.mrf.mxu1  ;;  %v618_v59 = vrot.slane %v431_v43, 1  ;;  %v435_v5 = vrot.slane %v431_v43, 7 }
  0xb2   :  { %v318_v42 = vadd.f32 %v317_v38, %v268_v37 }
  0xb3   :  { %v420_v40 = vmul.f32 %v1086_v31, %v412_v36 }
  0xb5   :  { %v428_v41 = vadd.f32 %v1087_v33, %v420_v40 }
  0xb7   :  { %v432_v44 = vmax.f32 %v428_v41, 0.0 }
  0xb8   :  { %v406_v45 = vpop.f32.mrf.mxu2  ;;  %v270_v51 = vpop.f32.mrf.mxu0 }
  0xb9   :  { %v413_v46 = vadd.f32 %v406_v45, %v318_v42  ;;  %v465_v48 = vpack.c.bf16 %v432_v44, %v431_v43  ;;  %v319_v52 = vpop.f32.mrf.mxu1  ;;  %v619_v54 = vrot.slane %v432_v44, 1  ;;  %v436_v3 = vrot.slane %v432_v44, 7 }
  0xba   :  { %v320_v57 = vadd.f32 %v319_v52, %v270_v51 }
  0xbb   :  { %v421_v50 = vmul.f32 %v1086_v31, %v413_v46  ;;  %540 = vmatmul.bf16.vlgmr.msra.gmra.mxu3 %v465_v48  ;;  %v624_v63 = vsel %vm326_vm2, %v618_v59, %v619_v54  ;;  %v441_v9 = vsel %vm169_vm0, %v435_v5, %v436_v3 }
  0xbd   :  { %v429_v53 = vadd.f32 %v1087_v33, %v421_v50 }
  0xbf   :  { %v433_v55 = vmax.f32 %v429_v53, 0.0 }
  0xc0   :  { %v408_v58 = vpop.f32.mrf.mxu2 }
  0xc1   :  { %v620_v56 = vrot.slane %v433_v55, 1  ;;  %v414_v60 = vadd.f32 %v408_v58, %v320_v57  ;;  %v437_v15 = vrot.slane %v433_v55, 7 }
  0xc3   :  { %v422_v61 = vmul.f32 %v1086_v31, %v414_v60  ;;  %v623_v62 = vsel %vm326_vm2, %v619_v54, %v620_v56  ;;  %v440_v17 = vsel %vm169_vm0, %v436_v3, %v437_v15 }
  0xc4   :  { %v1011_v0 = vpack.c.bf16 %v623_v62, %v624_v63 }
  0xc5   :  { %v430_v2 = vadd.f32 %v1087_v33, %v422_v61 }
  0xc6   :  { %1012 = vmatmul.msk.bf16.vlgmr.msrb.gmra.mxu1 %vm1010_vm8, %v1011_v0 }
  0xc7   :  { %v434_v4 = vmax.f32 %v430_v2, 0.0 }
  0xc8   :  { %v777_v19 = vpop.f32.mrf.mxu2 }
  0xc9   :  { %v438_v6 = vrot.slane %v434_v4, 7  ;;  %v466_v8 = vpack.c.bf16 %v434_v4, %v433_v55  ;;  %v621_v11 = vrot.slane %v434_v4, 1  ;;  %v791_v22 = vmul.f32 %v1088_v49, %v777_v19 }
  0xcb   :  { %545 = vmatmul.bf16.gmra.mxu3 %v466_v8  ;;  %v442_v10 = vsel %vm169_vm0, %v438_v6, %v435_v5  ;;  %v622_v12 = vsel %vm326_vm2, %v620_v56, %v621_v11  ;;  %v625_v13 = vsel %vm326_vm2, %v621_v11, %v618_v59  ;;  %v439_v7 = vsel %vm169_vm0, %v437_v15, %v438_v6 }
  0xcc   :  { %v973_v16 = vpack.c.bf16 %v441_v9, %v442_v10  ;;  %v1014_v14 = vpack.c.bf16 %v625_v13, %v622_v12  ;;  %v976_v18 = vpack.c.bf16 %v439_v7, %v440_v17  ;;  %v799_v25 = vadd.f32 %v1089_v23, %v791_v22 }
  0xce   :  { %974 = vmatmul.msk.bf16.vlgmr.msrb.gmra.mxu0 %vm972_vm9, %v973_v16  ;;  %v805_v31 = vmul.f32 %v804_v27, %v799_v25 }
  0xd0   :  { %v779_v24 = vpop.f32.mrf.mxu2 }
  0xd1   :  { %v792_v35 = vmul.f32 %v1088_v49, %v779_v24 }
  0xd3   :  { %v800_v41 = vadd.f32 %v1089_v23, %v792_v35 }
  0xd5   :  { %v806_v46 = vmul.f32 %v804_v27, %v800_v41 }
  0xd6   :  { %1015 = vmatmul.msk.bf16.gmra.mxu1 %vm1013_vm10, %v1014_v14 }
  0xd8   :  { %v782_v39 = vpop.f32.mrf.mxu2 }
  0xd9   :  { %v793_v44 = vmul.f32 %v1088_v49, %v782_v39 }
  0xdb   :  { %v801_v53 = vadd.f32 %v1089_v23, %v793_v44 }
  0xdd   :  { %v807_v59 = vmul.f32 %v804_v27, %v801_v53 }
  0xde   :  { %977 = vmatmul.msk.bf16.gmra.mxu0 %vm975_vm11, %v976_v18 }
  0xe0   :  { %v784_v58 = vpop.f32.mrf.mxu2 }
  0xe1   :  { %v794_v61 = vmul.f32 %v1088_v49, %v784_v58 }
  0xe3   :  { %v802_v5 = vadd.f32 %v1089_v23, %v794_v61 }
  0xe5   :  { %v808_v9 = vmul.f32 %v804_v27, %v802_v5 }
 0x13e   :  { %v541_v20 = vpop.f32.mrf.mxu3 }
 0x143   :  { %v706_v21 = vpop.f32.mrf.mxu1 }
 0x146   :  { %v543_v30 = vpop.f32.mrf.mxu3 }
 0x14b   :  { %v608_v1 = vpop.f32.mrf.mxu0  ;;  %v708_v33 = vpop.f32.mrf.mxu1 }
 0x14c   :  { %v609_v47 = vadd.f32 %v608_v1, %v541_v20 }
 0x14e   :  { %v716_v28 = vadd.f32 %v706_v21, %v609_v47  ;;  %v546_v45 = vpop.f32.mrf.mxu3 }
 0x150   :  { %v724_v32 = vmul.f32 %v1090_v26, %v716_v28 }
 0x152   :  { %v732_v34 = vadd.f32 %v1091_v29, %v724_v32 }
 0x153   :  { %v610_v36 = vpop.f32.mrf.mxu0  ;;  %v711_v50 = vpop.f32.mrf.mxu1 }
 0x154   :  { %v809_v37 = vadd.f32 %v805_v31, %v732_v34  ;;  %v611_v38 = vadd.f32 %v610_v36, %v543_v30 }
 0x156   :  { %v813_v40 = vmax.f32 %v809_v37, 0.0  ;;  %v717_v42 = vadd.f32 %v708_v33, %v611_v38  ;;  %v548_v62 = vpop.f32.mrf.mxu3 }
 0x158   :  { %817 = vst [vmem:[#allocation11] sm:$0xff] %v813_v40  ;;  %v725_v43 = vmul.f32 %v1090_v26, %v717_v42 }
 0x15a   :  { %v733_v48 = vadd.f32 %v1091_v29, %v725_v43 }
 0x15b   :  { %v613_v51 = vpop.f32.mrf.mxu0  ;;  %v713_v3 = vpop.f32.mrf.mxu1 }
 0x15c   :  { %v810_v52 = vadd.f32 %v806_v46, %v733_v48  ;;  %v614_v54 = vadd.f32 %v613_v51, %v546_v45 }
 0x15e   :  { %v814_v55 = vmax.f32 %v810_v52, 0.0  ;;  %v718_v57 = vadd.f32 %v711_v50, %v614_v54 }
 0x160   :  { %818 = vst [vmem:[#allocation11 + $0x8] sm:$0xff] %v814_v55  ;;  %v726_v56 = vmul.f32 %v1090_v26, %v718_v57 }
 0x162   :  { %v734_v60 = vadd.f32 %v1091_v29, %v726_v56 }
 0x163   :  { %v615_v63 = vpop.f32.mrf.mxu0 }
 0x164   :  { %v811_v0 = vadd.f32 %v807_v59, %v734_v60  ;;  %v616_v2 = vadd.f32 %v615_v63, %v548_v62 }
 0x166   :  { %v815_v4 = vmax.f32 %v811_v0, 0.0  ;;  %v719_v6 = vadd.f32 %v713_v3, %v616_v2 }
 0x168   :  { %819 = vst [vmem:[#allocation11 + $0x10] sm:$0xff] %v815_v4  ;;  %v727_v8 = vmul.f32 %v1090_v26, %v719_v6 }
 0x16a   :  { %v735_v10 = vadd.f32 %v1091_v29, %v727_v8 }
 0x16c   :  { %v812_v16 = vadd.f32 %v808_v9, %v735_v10 }
 0x16e   :  { %v816_v11 = vmax.f32 %v812_v16, 0.0 }
 0x170   :  { %820 = vst [vmem:[#allocation11 + $0x18] sm:$0xff] %v816_v11 }
 0x171   :  { %833 = dma.vmem_to_hbm [thread:$0]  %s826_s6, 512, %s828_s27, [#allocation5], %s1228_s28, %s1228_s28, %s1229_s29  }
 0x172   :  { %1218 = dma.done.wait [#allocation5], 512  }
 0x173   :  { %1219 = vsyncadd [#allocation5], 4294966784 }
 0x174   :  { %838 = vsyncpa [#allocation4], 1 }
 0x175   :  { %839 = vsyncpa [#allocation7], 1 }
 0x176   :  { %840 = vsyncpa [#allocation10], 1 }
 0x177   :  { %841 = vsyncpa [#allocation5], 1 }

</bundles_post_ra>
